<compile_context>
chip_gen: v5e
topology: v5e:2x2
jax: 0.10.0
libtpu: 0.0.40
codegen_flags: <defaults>
</compile_context>

<pallas_src>
import functools
import math

import jax
import jax.numpy as jnp
from jax import lax
from jax.experimental import pallas as pl
from jax.experimental.pallas import tpu as pltpu

# --- IC_Loss default hyper-parameters (the module's kwargs; no learned weights) ---
ALPHA = 0.5
BETA = 4.0
C1 = -0.125
C2 = -0.5
PHI_BG = 0.5
PHI_FG = 0.5
PHI_1_CF = 0.5
PHI_2_CF = 0.05
THETA_BG = 0.4
THETA_FG = 0.9
EPS = 1e-6
C3 = PHI_2_CF - BETA * math.log(1.0 + PHI_2_CF)
C4 = (BETA * math.log(1.0 + PHI_1_CF) - BETA * math.log(1.0 + PHI_2_CF)
      - PHI_1_CF ** 2 + PHI_2_CF)


def _cdiv(a, b):
    return -(-a // b)


def _round_up(a, b):
    return _cdiv(a, b) * b


def _vmem_plan():
    """Generation-aware scoped-VMEM limit + per-input block element budget."""
    try:
        cap = int(pltpu.get_tpu_info().vmem_capacity_bytes)
    except Exception:
        cap = 64 * 1024 * 1024        # conservative: smallest (v7x) physical VMEM
    vmem_limit = min(cap * 3 // 4, 96 * 1024 * 1024)   # v7x: 48 MiB, v5e/v6e: 96 MiB
    # Budget covers 2 inputs x 2 pipeline buffers (<= 4 B/elem) plus ~7 live
    # block-sized f32 intermediates that the kernel body keeps in scoped VMEM.
    elem_budget = min(1024 * 1024, vmem_limit // 64)   # v7x: ~768K, v5e/v6e: 1M elems
    return vmem_limit, elem_budget


def _block_plan(nc, hw, elem_budget):
    """Pick (b_nc, nb_nc, b_hw, nb_hw).

    Second-minor block dim is a multiple of 8 (or == full nc); minor block dim
    is a multiple of 128 (or == full hw) — satisfies the (8,128) constraint
    with NO host-side padding.
    """
    total = nc * hw
    # Aim for >= ~8 grid steps on large problems (double-buffering + v7x
    # megacore); small problems remain a single block.
    budget = min(elem_budget, max(128 * 1024, _cdiv(total, 8)))

    if _round_up(nc, 8) * 128 <= budget:
        b_nc = nc                                    # full nc extent, one row-block
    else:
        b_nc = min(4096, max(8, (budget // 128) // 8 * 8))
    nb_nc = _cdiv(nc, b_nc)

    row_alloc = _round_up(b_nc, 8)                   # VMEM sublane padding
    lane_cap = max(128, (budget // row_alloc) // 128 * 128)
    b_hw = hw if hw <= lane_cap else lane_cap        # full hw extent is always legal
    nb_hw = _cdiv(hw, b_hw)
    return b_nc, nb_nc, b_hw, nb_hw


def _ic_loss_kernel(pred_ref, target_ref, out_ref, *, nc, hw, b_nc, b_hw,
                    mask_rows, mask_cols):
    """One grid step = a (b_nc, b_hw) tile of the (N*C, H*W) maps.

    out_ref is this block's private (1, 1, b_nc, 128) tile of per-row partials:
      lane 0: area_BG row count   (t in [0, theta_BG])
      lane 1: area_CF row count   (t >  theta_FG)
      lane 2: row sum of valid_fg * LFG        (CLoss_FG numerator)
      lane 3: row sum of intensity_CF * LCF    (Loss_CF spatial numerator)
    (CLoss_BG is identically zero and omega==1 on the FG valid set — see header.)
    """
    # DMA'd at the stored width; math in f32 (v5e has no bf16 VALU).
    p = pred_ref[...].astype(jnp.float32)    # (b_nc, b_hw)
    t = target_ref[...].astype(jnp.float32)

    # Mask ragged trailing blocks by pushing t out of every threshold window.
    # (Static trace-time opt-in: zero cost when the grid tiles evenly.)
    if mask_rows:
        row = (pl.program_id(0) * b_nc
               + lax.broadcasted_iota(jnp.int32, (b_nc, 1), 0))
        t = jnp.where(row < nc, t, jnp.float32(-1.0))
    if mask_cols:
        col = (pl.program_id(1) * b_hw
               + lax.broadcasted_iota(jnp.int32, (1, b_hw), 1))
        t = jnp.where(col < hw, t, jnp.float32(-1.0))

    d = jnp.abs(t - p)
    d2 = d * d
    zero = jnp.float32(0.0)
    one = jnp.float32(1.0)

    # ---- CLoss_FG spatial term (omega * valid_fg == valid_fg, exactly) ----
    valid_fg = ((t >= THETA_BG) & (t < THETA_FG)
                & (p >= THETA_BG) & (p < THETA_FG))
    lfg = jnp.where(d > PHI_FG, d2, d + C2)
    row_fg = jnp.sum(jnp.where(valid_fg, lfg, zero), axis=-1, keepdims=True)

    # ---- Loss_CF spatial term (un-weighted) ----
    lcf = jnp.where(
        d > PHI_1_CF, d2,
        jnp.where(d > PHI_2_CF, BETA * jnp.log(1.0 + d) + C3, d + C4))
    im_cf = (t >= THETA_FG) & (t < 1.0)
    row_cf = jnp.sum(jnp.where(im_cf, lcf, zero), axis=-1, keepdims=True)

    # ---- calc_magnitude row areas (per (n, c) slice partials) ----
    row_abg = jnp.sum(jnp.where((t >= 0.0) & (t <= THETA_BG), one, zero),
                      axis=-1, keepdims=True)
    row_acf = jnp.sum(jnp.where(t > THETA_FG, one, zero),
                      axis=-1, keepdims=True)

    lane = lax.broadcasted_iota(jnp.int32, (b_nc, 128), 1)
    out = (jnp.where(lane == 0, row_abg, zero)
           + jnp.where(lane == 1, row_acf, zero)
           + jnp.where(lane == 2, row_fg, zero)
           + jnp.where(lane == 3, row_cf, zero))
    out_ref[...] = out.reshape(out_ref.shape)


def ic_loss(pred, target):
    """IC_Loss forward. pred/target: (N, C, H, W), values in [0, 1]. Returns f32 scalar."""
    N, C, H, W = pred.shape
    nc, hw = N * C, H * W

    # Free metadata reshape — no extra HBM pass, no host-side pad/upcast.
    p2 = pred.reshape(nc, hw)
    t2 = target.reshape(nc, hw)

    vmem_limit, elem_budget = _vmem_plan()
    b_nc, nb_nc, b_hw, nb_hw = _block_plan(nc, hw, elem_budget)
    mask_rows = (nc % b_nc) != 0
    mask_cols = (hw % b_hw) != 0

    kernel = functools.partial(
        _ic_loss_kernel, nc=nc, hw=hw, b_nc=b_nc, b_hw=b_hw,
        mask_rows=mask_rows, mask_cols=mask_cols)

    partials = pl.pallas_call(
        kernel,
        out_shape=jax.ShapeDtypeStruct((nb_nc, nb_hw, b_nc, 128), jnp.float32),
        grid_spec=pltpu.PrefetchScalarGridSpec(
            num_scalar_prefetch=0,
            grid=(nb_nc, nb_hw),
            in_specs=[
                pl.BlockSpec((b_nc, b_hw), lambda i, j: (i, j)),
                pl.BlockSpec((b_nc, b_hw), lambda i, j: (i, j)),
            ],
            out_specs=pl.BlockSpec((1, 1, b_nc, 128), lambda i, j: (i, j, 0, 0)),
        ),
        compiler_params=pltpu.CompilerParams(
            dimension_semantics=("parallel", "parallel"),
            vmem_limit_bytes=vmem_limit),
    )(p2, t2)

    # Tiny epilogue in plain JAX.
    area_bg = jnp.sum(partials[..., 0], axis=1)      # (nb_nc, b_nc) per-row areas
    area_cf = jnp.sum(partials[..., 1], axis=1)
    s_fg = jnp.sum(partials[..., 2])
    s_cf = jnp.sum(partials[..., 3])
    # Masked / out-of-range rows have area_bg == area_cf == 0 -> contribute 0.
    s_omega = jnp.sum(area_bg / (area_cf + EPS))

    total = jnp.float32(nc * hw)
    closs_bg = jnp.float32(0.0)          # identically zero (mask algebra; matches reference)
    closs_fg = s_fg / total
    # mean over the broadcast (N,C,N,C,H,W) tensor == mean(omega_CF) * mean(LCF*IM)
    loss_cf = (s_omega / jnp.float32(nc)) * (s_cf / total)
    return closs_bg + closs_fg + loss_cf


def _ic_loss_ref(pred, target):
    """Pure-JAX reference mirroring the PyTorch code (incl. its broadcasting)."""
    p = pred.astype(jnp.float32)
    t = target.astype(jnp.float32)
    d = jnp.abs(t - p)

    l_t = ((t >= THETA_BG) & (t < THETA_FG)).astype(jnp.float32)
    l_p = ((p >= THETA_BG) & (p < THETA_FG)).astype(jnp.float32)
    ce = -(l_t * jnp.log(t + EPS) + l_p * jnp.log(p + EPS))
    om = jnp.where(ce == 0.0, 0.0, 1.0)

    lbg = jnp.where(d > PHI_BG, d ** 2, ALPHA * d ** 2 + C1)
    vbg = (((t >= 0) & (t < THETA_BG)).astype(jnp.float32)
           * ((p >= 0) & (p < THETA_BG)).astype(jnp.float32))
    closs_bg = jnp.mean(lbg * om * vbg)

    lfg = jnp.where(d > PHI_FG, d ** 2, d + C2)
    vfg = (((t >= THETA_BG) & (t < THETA_FG)).astype(jnp.float32)
           * ((p >= THETA_BG) & (p < THETA_FG)).astype(jnp.float32))
    closs_fg = jnp.mean(lfg * om * vfg)

    area_bg = jnp.sum((t >= 0) & (t <= THETA_BG), axis=(2, 3), keepdims=True)
    area_cf = jnp.sum(t > THETA_FG, axis=(2, 3), keepdims=True)
    omega_cf = area_bg / (area_cf + EPS)                       # (N, C, 1, 1)
    lcf = jnp.where(d > PHI_1_CF, d ** 2,
                    jnp.where(d > PHI_2_CF, BETA * jnp.log(1 + d) + C3, d + C4))
    im = ((t >= THETA_FG) & (t < 1.0)).astype(jnp.float32)
    # same right-aligned broadcast as torch: (N,C,1,1,1,1) vs (N,C,H,W)
    loss_cf = jnp.mean(lcf * omega_cf[..., None, None] * im)

    return closs_bg + closs_fg + loss_cf


if __name__ == "__main__":
    key = jax.random.PRNGKey(0)
    k1, k2 = jax.random.split(key)
    pred = jax.random.uniform(k1, (2, 4, 16, 16), dtype=jnp.float32)
    target = jax.random.uniform(k2, (2, 4, 16, 16), dtype=jnp.float32)

    out = jax.block_until_ready(ic_loss(pred, target))
    ref = jax.block_until_ready(_ic_loss_ref(pred, target))
    assert jnp.allclose(out, ref, rtol=1e-4, atol=1e-5), (out, ref)
    print("KERNEL_OK")
</pallas_src>

<mosaic_0001>
module attributes {stable_mosaic.version = 11 : i64} {
  func.func @_ic_loss_kernel(%arg0: i32, %arg1: i32, %arg2: memref<8x256xf32, #tpu.memory_space<vmem>>, %arg3: memref<8x256xf32, #tpu.memory_space<vmem>>, %arg4: memref<1x1x8x128xf32, #tpu.memory_space<vmem>>) attributes {dimension_semantics = [#tpu.dimension_semantics<parallel>, #tpu.dimension_semantics<parallel>], iteration_bounds = array<i64: 1, 1>, scalar_prefetch = 0 : i64, scratch_operands = 0 : i64, tpu.core_type = #tpu.core_type<tc>, window_params = [{transform_indices = @transform_0, window_bounds = array<i64: 8, 256>}, {transform_indices = @transform_1, window_bounds = array<i64: 8, 256>}, {transform_indices = @transform_2, window_bounds = array<i64: 1, 1, 8, 128>}]} {
    %c0 = arith.constant 0 : index
    %c0_0 = arith.constant 0 : index
    %0 = vector.load %arg2[%c0, %c0_0] : memref<8x256xf32, #tpu.memory_space<vmem>>, vector<8x256xf32>
    %c0_1 = arith.constant 0 : index
    %c0_2 = arith.constant 0 : index
    %1 = vector.load %arg3[%c0_1, %c0_2] : memref<8x256xf32, #tpu.memory_space<vmem>>, vector<8x256xf32>
    %2 = arith.subf %1, %0 : vector<8x256xf32>
    %3 = math.absf %2 : vector<8x256xf32>
    %4 = arith.mulf %3, %3 : vector<8x256xf32>
    %cst = arith.constant 4.000000e-01 : f32
    %5 = vector.broadcast %cst : f32 to vector<8x256xf32>
    %6 = arith.cmpf oge, %1, %5 : vector<8x256xf32>
    %cst_3 = arith.constant 0.899999976 : f32
    %7 = vector.broadcast %cst_3 : f32 to vector<8x256xf32>
    %8 = arith.cmpf olt, %1, %7 : vector<8x256xf32>
    %9 = arith.andi %6, %8 : vector<8x256xi1>
    %cst_4 = arith.constant 4.000000e-01 : f32
    %10 = vector.broadcast %cst_4 : f32 to vector<8x256xf32>
    %11 = arith.cmpf oge, %0, %10 : vector<8x256xf32>
    %12 = arith.andi %9, %11 : vector<8x256xi1>
    %cst_5 = arith.constant 0.899999976 : f32
    %13 = vector.broadcast %cst_5 : f32 to vector<8x256xf32>
    %14 = arith.cmpf olt, %0, %13 : vector<8x256xf32>
    %15 = arith.andi %12, %14 : vector<8x256xi1>
    %cst_6 = arith.constant 5.000000e-01 : f32
    %16 = vector.broadcast %cst_6 : f32 to vector<8x256xf32>
    %17 = arith.cmpf ogt, %3, %16 : vector<8x256xf32>
    %cst_7 = arith.constant -5.000000e-01 : f32
    %18 = vector.broadcast %cst_7 : f32 to vector<8x256xf32>
    %19 = arith.addf %3, %18 : vector<8x256xf32>
    %20 = arith.select %17, %4, %19 : vector<8x256xi1>, vector<8x256xf32>
    %cst_8 = arith.constant 0.000000e+00 : f32
    %21 = vector.broadcast %cst_8 : f32 to vector<8x256xf32>
    %22 = arith.select %15, %20, %21 : vector<8x256xi1>, vector<8x256xf32>
    %cst_9 = arith.constant dense<0.000000e+00> : vector<8xf32>
    %23 = vector.multi_reduction <add>, %22, %cst_9 [1] : vector<8x256xf32> to vector<8xf32>
    %24 = vector.shape_cast %23 : vector<8xf32> to vector<8x1xf32>
    %cst_10 = arith.constant 5.000000e-01 : f32
    %25 = vector.broadcast %cst_10 : f32 to vector<8x256xf32>
    %26 = arith.cmpf ogt, %3, %25 : vector<8x256xf32>
    %cst_11 = arith.constant 5.000000e-02 : f32
    %27 = vector.broadcast %cst_11 : f32 to vector<8x256xf32>
    %28 = arith.cmpf ogt, %3, %27 : vector<8x256xf32>
    %cst_12 = arith.constant 1.000000e+00 : f32
    %29 = vector.broadcast %cst_12 : f32 to vector<8x256xf32>
    %30 = arith.addf %29, %3 : vector<8x256xf32>
    %31 = math.log %30 : vector<8x256xf32>
    %cst_13 = arith.constant 4.000000e+00 : f32
    %32 = vector.broadcast %cst_13 : f32 to vector<8x256xf32>
    %33 = arith.mulf %32, %31 : vector<8x256xf32>
    %cst_14 = arith.constant -0.14516066 : f32
    %34 = vector.broadcast %cst_14 : f32 to vector<8x256xf32>
    %35 = arith.addf %33, %34 : vector<8x256xf32>
    %cst_15 = arith.constant 1.22669983 : f32
    %36 = vector.broadcast %cst_15 : f32 to vector<8x256xf32>
    %37 = arith.addf %3, %36 : vector<8x256xf32>
    %38 = arith.select %28, %35, %37 : vector<8x256xi1>, vector<8x256xf32>
    %39 = arith.select %26, %4, %38 : vector<8x256xi1>, vector<8x256xf32>
    %cst_16 = arith.constant 0.899999976 : f32
    %40 = vector.broadcast %cst_16 : f32 to vector<8x256xf32>
    %41 = arith.cmpf oge, %1, %40 : vector<8x256xf32>
    %cst_17 = arith.constant 1.000000e+00 : f32
    %42 = vector.broadcast %cst_17 : f32 to vector<8x256xf32>
    %43 = arith.cmpf olt, %1, %42 : vector<8x256xf32>
    %44 = arith.andi %41, %43 : vector<8x256xi1>
    %cst_18 = arith.constant 0.000000e+00 : f32
    %45 = vector.broadcast %cst_18 : f32 to vector<8x256xf32>
    %46 = arith.select %44, %39, %45 : vector<8x256xi1>, vector<8x256xf32>
    %cst_19 = arith.constant dense<0.000000e+00> : vector<8xf32>
    %47 = vector.multi_reduction <add>, %46, %cst_19 [1] : vector<8x256xf32> to vector<8xf32>
    %48 = vector.shape_cast %47 : vector<8xf32> to vector<8x1xf32>
    %cst_20 = arith.constant 0.000000e+00 : f32
    %49 = vector.broadcast %cst_20 : f32 to vector<8x256xf32>
    %50 = arith.cmpf oge, %1, %49 : vector<8x256xf32>
    %cst_21 = arith.constant 4.000000e-01 : f32
    %51 = vector.broadcast %cst_21 : f32 to vector<8x256xf32>
    %52 = arith.cmpf ole, %1, %51 : vector<8x256xf32>
    %53 = arith.andi %50, %52 : vector<8x256xi1>
    %cst_22 = arith.constant 1.000000e+00 : f32
    %cst_23 = arith.constant 0.000000e+00 : f32
    %54 = vector.broadcast %cst_22 : f32 to vector<8x256xf32>
    %55 = vector.broadcast %cst_23 : f32 to vector<8x256xf32>
    %56 = arith.select %53, %54, %55 : vector<8x256xi1>, vector<8x256xf32>
    %cst_24 = arith.constant dense<0.000000e+00> : vector<8xf32>
    %57 = vector.multi_reduction <add>, %56, %cst_24 [1] : vector<8x256xf32> to vector<8xf32>
    %58 = vector.shape_cast %57 : vector<8xf32> to vector<8x1xf32>
    %cst_25 = arith.constant 0.899999976 : f32
    %59 = vector.broadcast %cst_25 : f32 to vector<8x256xf32>
    %60 = arith.cmpf ogt, %1, %59 : vector<8x256xf32>
    %cst_26 = arith.constant 1.000000e+00 : f32
    %cst_27 = arith.constant 0.000000e+00 : f32
    %61 = vector.broadcast %cst_26 : f32 to vector<8x256xf32>
    %62 = vector.broadcast %cst_27 : f32 to vector<8x256xf32>
    %63 = arith.select %60, %61, %62 : vector<8x256xi1>, vector<8x256xf32>
    %cst_28 = arith.constant dense<0.000000e+00> : vector<8xf32>
    %64 = vector.multi_reduction <add>, %63, %cst_28 [1] : vector<8x256xf32> to vector<8xf32>
    %65 = vector.shape_cast %64 : vector<8xf32> to vector<8x1xf32>
    %66 = tpu.iota {dimensions = array<i32: 1>} : vector<8x128xi32>
    %c0_i32 = arith.constant 0 : i32
    %67 = vector.broadcast %c0_i32 : i32 to vector<8x128xi32>
    %68 = arith.cmpi eq, %66, %67 : vector<8x128xi32>
    %cst_29 = arith.constant 0.000000e+00 : f32
    %69 = vector.shape_cast %58 : vector<8x1xf32> to vector<8x1xf32>
    %70 = vector.broadcast %69 : vector<8x1xf32> to vector<8x128xf32>
    %71 = vector.broadcast %cst_29 : f32 to vector<8x128xf32>
    %72 = arith.select %68, %70, %71 : vector<8x128xi1>, vector<8x128xf32>
    %c1_i32 = arith.constant 1 : i32
    %73 = vector.broadcast %c1_i32 : i32 to vector<8x128xi32>
    %74 = arith.cmpi eq, %66, %73 : vector<8x128xi32>
    %cst_30 = arith.constant 0.000000e+00 : f32
    %75 = vector.shape_cast %65 : vector<8x1xf32> to vector<8x1xf32>
    %76 = vector.broadcast %75 : vector<8x1xf32> to vector<8x128xf32>
    %77 = vector.broadcast %cst_30 : f32 to vector<8x128xf32>
    %78 = arith.select %74, %76, %77 : vector<8x128xi1>, vector<8x128xf32>
    %79 = arith.addf %72, %78 : vector<8x128xf32>
    %c2_i32 = arith.constant 2 : i32
    %80 = vector.broadcast %c2_i32 : i32 to vector<8x128xi32>
    %81 = arith.cmpi eq, %66, %80 : vector<8x128xi32>
    %cst_31 = arith.constant 0.000000e+00 : f32
    %82 = vector.shape_cast %24 : vector<8x1xf32> to vector<8x1xf32>
    %83 = vector.broadcast %82 : vector<8x1xf32> to vector<8x128xf32>
    %84 = vector.broadcast %cst_31 : f32 to vector<8x128xf32>
    %85 = arith.select %81, %83, %84 : vector<8x128xi1>, vector<8x128xf32>
    %86 = arith.addf %79, %85 : vector<8x128xf32>
    %c3_i32 = arith.constant 3 : i32
    %87 = vector.broadcast %c3_i32 : i32 to vector<8x128xi32>
    %88 = arith.cmpi eq, %66, %87 : vector<8x128xi32>
    %cst_32 = arith.constant 0.000000e+00 : f32
    %89 = vector.shape_cast %48 : vector<8x1xf32> to vector<8x1xf32>
    %90 = vector.broadcast %89 : vector<8x1xf32> to vector<8x128xf32>
    %91 = vector.broadcast %cst_32 : f32 to vector<8x128xf32>
    %92 = arith.select %88, %90, %91 : vector<8x128xi1>, vector<8x128xf32>
    %93 = arith.addf %86, %92 : vector<8x128xf32>
    %94 = vector.shape_cast %93 : vector<8x128xf32> to vector<1x1x8x128xf32>
    %c0_33 = arith.constant 0 : index
    %c0_34 = arith.constant 0 : index
    %c0_35 = arith.constant 0 : index
    %c0_36 = arith.constant 0 : index
    %95 = vector.load %arg4[%c0_33, %c0_34, %c0_35, %c0_36] : memref<1x1x8x128xf32, #tpu.memory_space<vmem>>, vector<1x1x8x128xf32>
    tpu.vector_store %arg4[%c0_33, %c0_34, %c0_35, %c0_36], %94 {strides = array<i32>} : memref<1x1x8x128xf32, #tpu.memory_space<vmem>>, vector<1x1x8x128xf32>,
    return
  }
  func.func @transform_0(%arg0: i32, %arg1: i32) -> (i32, i32) {
    %c0_i32 = arith.constant 0 : i32
    return %arg0, %arg1 : i32, i32
  }
  func.func @transform_1(%arg0: i32, %arg1: i32) -> (i32, i32) {
    %c0_i32 = arith.constant 0 : i32
    return %arg0, %arg1 : i32, i32
  }
  func.func @transform_2(%arg0: i32, %arg1: i32) -> (i32, i32, i32, i32) {
    %c0_i32 = arith.constant 0 : i32
    %c0_i32_0 = arith.constant 0 : i32
    %c0_i32_1 = arith.constant 0 : i32
    return %arg0, %arg1, %c0_i32, %c0_i32_0 : i32, i32, i32, i32
  }
}

</mosaic_0001>

<bundles_post_ra>
// kernel: tpu_custom_call.1
= control target key start
LH: loop header
LB: loop body
LE: loop exit
PB: predicated region body
PF: predicated region fallthrough
CT: control target
= control target key end

     0   :  { %7 = vsyncpa [#allocation3], 0  ;;  %s294_s0 = inlined_call_operand.hbm [shape: f32[8,256], index: 0, kind: input, shape index: {}]   ;;  %s295_s1 = inlined_call_operand.hbm [shape: f32[8,256], index: 1, kind: input, shape index: {}]   ;;  %s296_s2 = inlined_call_operand.hbm [shape: f32[1,1,8,128], index: 2, kind: output, shape index: {}]  }
   0x1   :  { %8 = vsyncpa [#allocation6], 0 }
   0x2   :  { %9 = vsyncpa [#allocation4], 0  ;;  %s15_s11 = sshll.u32 %s294_s0, 4  ;;  %s240_s12 = smov [#allocation2]   ;;  %s16_s11 = int_to_ptr.hbm [resolvable:$true] %s15_s11 }
   0x3   :  { %s17_s13 = sshll.u32 %s240_s12, 4  ;;  %s26_s16 = sshll.u32 %s295_s1, 4  ;;  %s18_s13 = int_to_ptr.vmem [resolvable:$true] %s17_s13  ;;  %s27_s16 = int_to_ptr.hbm [resolvable:$true] %s26_s16 }
   0x4   :  { %20 = dma.hbm_to_vmem [thread:$0]  %s16_s11, 256, %s18_s13, [#allocation3]  }
   0x5   :  { %s241_s17 = smov [#allocation5]  }
   0x6   :  { %s28_s18 = sshll.u32 %s241_s17, 4  ;;  %s29_s18 = int_to_ptr.vmem [resolvable:$true] %s28_s18 }
   0x7   :  { %31 = dma.hbm_to_vmem [thread:$0]  %s27_s16, 256, %s29_s18, [#allocation6]  }
   0x8   :  { %234 = dma.done.wait [#allocation3], 256  }
   0x9   :  { %235 = vsyncadd [#allocation3], 4294967040 }
   0xa   :  { %236 = dma.done.wait [#allocation6], 256  }
   0xb   :  { %237 = vsyncadd [#allocation6], 4294967040  ;;  %v265_v0 = vld [vmem:[#allocation5] sm:$0xff]  ;;  %v267_v1 = vld [vmem:[#allocation5 + $0x8] sm:$0xff]  ;;  %v242_v5 = vmov 0.0   ;;  %v122_v44 = vlaneseq  ;;  %s243_s0 = smov [#allocation7]  }
   0xc   :  { %v40_v2 = vld [vmem:[#allocation2] sm:$0xff]  ;;  %vm104_vm0 = vcmp.ge.f32.partialorder %v265_v0, 0.0  ;;  %vm105_vm1 = vcmp.ge.f32.partialorder %v267_v1, 0.0  ;;  %vm106_vm2 = vcmp.le.f32.partialorder %v265_v0, 0.4  ;;  %v41_v3 = vld [vmem:[#allocation2 + $0x8] sm:$0xff] }
   0xd   :  { %vm107_vm3 = vcmp.le.f32.partialorder %v267_v1, 0.4  ;;  %vm108_vm4 = vmand %vm104_vm0, %vm106_vm2  ;;  %vm115_vm5 = vcmp.gt.f32.partialorder %v265_v0, 0.9  ;;  %v44_v4 = vsub.f32 %v265_v0, %v40_v2  ;;  %vm116_vm7 = vcmp.gt.f32.partialorder %v267_v1, 0.9 }
   0xe   :  { %vm109_vm6 = vmand %vm105_vm1, %vm107_vm3  ;;  %v110_v6 = vsel %vm108_vm4, 1.0, %v242_v5  ;;  %v45_v7 = vsub.f32 %v267_v1, %v41_v3  ;;  %v117_v9 = vsel %vm115_vm5, 1.0, %v242_v5  ;;  %vm50_vm8 = vcmp.ge.f32.partialorder %v265_v0, 0.4  ;;  %s141_s1 = sshll.u32 %s243_s0, 4  ;;  %s143_s21 = sshll.u32 %s296_s2, 4  ;;  %s142_s1 = int_to_ptr.vmem [resolvable:$true] %s141_s1  ;;  %s144_s21 = int_to_ptr.hbm [resolvable:$true] %s143_s21 }
   0xf   :  { %v111_v8 = vsel %vm109_vm6, 1.0, %v242_v5  ;;  %v46_v10 = vand.u32 2147483647, %v44_v4  ;;  %vm51_vm9 = vcmp.ge.f32.partialorder %v267_v1, 0.4  ;;  %v118_v14 = vsel %vm116_vm7, 1.0, %v242_v5 }
  0x10   :  { %v112_v11 = vadd.f32 %v111_v8, %v110_v6  ;;  %v47_v12 = vand.u32 2147483647, %v45_v7  ;;  %vm52_vm10 = vcmp.lt.f32.partialorder %v265_v0, 0.9  ;;  %vm53_vm11 = vcmp.lt.f32.partialorder %v267_v1, 0.9 }
  0x11   :  { %v48_v13 = vmul.f32 %v46_v10, %v46_v10  ;;  %vm54_vm12 = vmand %vm50_vm8, %vm52_vm10  ;;  %vm56_vm13 = vcmp.ge.f32.partialorder %v40_v2, 0.4  ;;  %vm57_vm14 = vcmp.ge.f32.partialorder %v41_v3, 0.4  ;;  %vm60_vm0 = vcmp.lt.f32.partialorder %v40_v2, 0.9 }
  0x12   :  { %113 = vadd.xlane.f32.xlu0 %v112_v11  ;;  %v49_v15 = vmul.f32 %v47_v12, %v47_v12  ;;  %vm55_vm15 = vmand %vm51_vm9, %vm53_vm11  ;;  %vm64_vm1 = vcmp.gt.f32.partialorder %v46_v10, 0.5  ;;  %vm61_vm3 = vcmp.lt.f32.partialorder %v41_v3, 0.9  ;;  %vm65_vm4 = vcmp.gt.f32.partialorder %v47_v12, 0.5 }
  0x13   :  { %vm58_vm2 = vmand %vm54_vm12, %vm56_vm13  ;;  %v66_v16 = vadd.f32 -0.5, %v46_v10  ;;  %v67_v17 = vadd.f32 -0.5, %v47_v12  ;;  %v77_v18 = vadd.f32 1.0, %v46_v10  ;;  %v78_v19 = vadd.f32 1.0, %v47_v12 }
  0x14   :  { %vm59_vm5 = vmand %vm55_vm15, %vm57_vm14  ;;  %v119_v22 = vadd.f32 %v118_v14, %v117_v9  ;;  %vm75_vm7 = vcmp.gt.f32.partialorder %v46_v10, 0.05  ;;  %v87_v31 = vadd.f32 1.2266998, %v46_v10  ;;  %vm93_vm9 = vcmp.ge.f32.partialorder %v265_v0, 0.9 }
  0x15   :  { %vm62_vm6 = vmand %vm58_vm2, %vm60_vm0  ;;  %v68_v20 = vsel %vm64_vm1, %v48_v13, %v66_v16  ;;  %v69_v21 = vsel %vm65_vm4, %v49_v15, %v67_v17  ;;  %158 = vlog2.f32 %v77_v18  ;;  %vm95_vm10 = vcmp.lt.f32.partialorder %v265_v0, 1.0 }
  0x16   :  { %vm63_vm8 = vmand %vm59_vm5, %vm61_vm3  ;;  %v70_v23 = vsel %vm62_vm6, %v68_v20, 0.0  ;;  %160 = vlog2.f32 %v78_v19  ;;  %v88_v33 = vadd.f32 1.2266998, %v47_v12  ;;  %vm94_vm11 = vcmp.ge.f32.partialorder %v267_v1, 0.9 }
  0x17   :  { %v71_v24 = vsel %vm63_vm8, %v69_v21, 0.0  ;;  %vm96_vm12 = vcmp.lt.f32.partialorder %v267_v1, 1.0  ;;  %vm76_vm13 = vcmp.gt.f32.partialorder %v47_v12, 0.05  ;;  %vm97_vm14 = vmand %vm93_vm9, %vm95_vm10  ;;  %v123_v45 = vand.u32 127, %v122_v44 }
  0x18   :  { %v72_v25 = vadd.f32 %v71_v24, %v70_v23  ;;  %vm98_vm15 = vmand %vm94_vm11, %vm96_vm12 }
  0x19   :  { %vm124_vm0 = vcmp.eq.s32.totalorder %v123_v45, 0  ;;  %vm126_vm2 = vcmp.eq.s32.totalorder %v123_v45, 1  ;;  %vm129_vm3 = vcmp.eq.s32.totalorder %v123_v45, 2  ;;  %vm132_vm5 = vcmp.eq.s32.totalorder %v123_v45, 3 }
  0x1a   :  { %120 = vadd.xlane.f32.xlu0 %v119_v22  ;;  %73 = vadd.xlane.f32.xlu1 %v72_v25 }
  0x1b   :  { %v159_v26 = vpop.eup %158 }
  0x1c   :  { %v161_v27 = vpop.eup %160  ;;  %v80_v28 = vmul.f32 0.6931472, %v159_v26 }
  0x1d   :  { %v82_v29 = vmul.f32 0.6931472, %v161_v27 }
  0x1e   :  { %v83_v30 = vmul.f32 4.0, %v80_v28 }
  0x1f   :  { %v84_v32 = vmul.f32 4.0, %v82_v29 }
  0x20   :  { %v85_v34 = vadd.f32 -0.14516066, %v83_v30 }
  0x21   :  { %v86_v35 = vadd.f32 -0.14516066, %v84_v32 }
  0x22   :  { %v89_v36 = vsel %vm75_vm7, %v85_v34, %v87_v31 }
  0x23   :  { %v90_v37 = vsel %vm76_vm13, %v86_v35, %v88_v33  ;;  %v91_v38 = vsel %vm64_vm1, %v48_v13, %v89_v36 }
  0x24   :  { %v92_v39 = vsel %vm65_vm4, %v49_v15, %v90_v37  ;;  %v99_v40 = vsel %vm97_vm14, %v91_v38, 0.0 }
  0x25   :  { %v100_v41 = vsel %vm98_vm15, %v92_v39, 0.0 }
  0x26   :  { %v101_v42 = vadd.f32 %v100_v41, %v99_v40 }
  0x28   :  { %102 = vadd.xlane.f32.xlu1 %v101_v42 }
  0x85   :  { %v114_v43 = vpop.xlane.xlu0 %113 }
  0x86   :  { %v125_v48 = vsel %vm124_vm0, %v114_v43, 0.0 }
  0x8d   :  { %v121_v46 = vpop.xlane.xlu0 %120  ;;  %v74_v47 = vpop.xlane.xlu1 %73 }
  0x8e   :  { %v127_v49 = vsel %vm126_vm2, %v121_v46, 0.0  ;;  %v130_v51 = vsel %vm129_vm3, %v74_v47, 0.0 }
  0x8f   :  { %v128_v50 = vadd.f32 %v127_v49, %v125_v48 }
  0x91   :  { %v131_v52 = vadd.f32 %v130_v51, %v128_v50 }
  0x9b   :  { %v103_v53 = vpop.xlane.xlu1 %102 }
  0x9c   :  { %v133_v54 = vsel %vm132_vm5, %v103_v53, 0.0 }
  0x9d   :  { %v134_v55 = vadd.f32 %v133_v54, %v131_v52 }
  0x9f   :  { %135 = vst [vmem:[#allocation7] sm:$0xff] %v134_v55 }
  0xa0   :  { %146 = dma.vmem_to_hbm [thread:$0]  %s142_s1, 128, %s144_s21, [#allocation4]  }
  0xa1   :  { %238 = dma.done.wait [#allocation4], 128  }
  0xa2   :  { %239 = vsyncadd [#allocation4], 4294967168 }
  0xa3   :  { %151 = vsyncpa [#allocation3], 1 }
  0xa4   :  { %152 = vsyncpa [#allocation6], 1 }
  0xa5   :  { %153 = vsyncpa [#allocation4], 1 }

</bundles_post_ra>
